<compile_context>
chip_gen: v6e
topology: v6e:2x2x1
jax: 0.10.0
libtpu: 0.0.40
codegen_flags: <defaults>
</compile_context>

<pallas_src>
import functools

import jax
import jax.numpy as jnp
from jax.experimental import pallas as pl
from jax.experimental.pallas import tpu as pltpu

_INV_SQRT2 = 0.7071067811865476

# Sublane packing per element size (bytes -> rows per vreg sublane group).
_SUBLANE_PACK = {4: 8, 2: 16, 1: 32}

# Approximate machine balance (FLOP / HBM byte) per generation, used to size
# the token tile in the weight-streaming regime.
_MACHINE_BALANCE = {"v5e": 240, "v6e": 650, "v7x": 310, "v5p": 300, "v4": 250}


# ---------------------------------------------------------------------------
# Kernel body
# ---------------------------------------------------------------------------
def _mlp_kernel(x_ref, wfc_ref, bfc_ref, wproj_ref, bproj_ref, o_ref, acc_ref,
                *, lowp_gelu: bool):
    j = pl.program_id(1)

    @pl.when(j == 0)
    def _():
        acc_ref[...] = jnp.zeros_like(acc_ref)

    x = x_ref[...]                                            # (tm, W), native dtype
    # c_fc chunk on the MXU in the native dtype, f32 accumulation.
    h = jnp.dot(x, wfc_ref[...], preferred_element_type=jnp.float32)

    if lowp_gelu:
        # bf16 elementwise path (v6e/v7x have a bf16 VPU): halves VALU work and
        # vreg pressure of the (tm, th) intermediate.  Output is bf16 anyway.
        h = h.astype(x_ref.dtype) + bfc_ref[...]
        h = 0.5 * h * (1.0 + jax.lax.erf(h * _INV_SQRT2))
        h = h.astype(x_ref.dtype)
    else:
        h = h + bfc_ref[...].astype(jnp.float32)              # (tm, th) + (1, th)
        # Exact erf GELU (matches torch.nn.GELU default), in f32.
        h = 0.5 * h * (1.0 + jax.lax.erf(h * _INV_SQRT2))
        # Feed the MXU in the compute dtype again (no-op for f32).
        h = h.astype(x_ref.dtype)

    acc_ref[...] += jnp.dot(h, wproj_ref[...], preferred_element_type=jnp.float32)

    @pl.when(j == pl.num_programs(1) - 1)
    def _():
        out = acc_ref[...] + bproj_ref[...].astype(jnp.float32)
        o_ref[...] = out.astype(o_ref.dtype)


# ---------------------------------------------------------------------------
# Hardware / capability queries (cached, outside the hot path)
# ---------------------------------------------------------------------------
@functools.lru_cache(maxsize=None)
def _tpu_generation():
    try:
        kind = jax.devices()[0].device_kind.lower()
    except Exception:
        return "unknown"
    if "v5 lite" in kind or "v5lite" in kind or "v5e" in kind:
        return "v5e"
    if "v6" in kind:
        return "v6e"
    if "v7" in kind:
        return "v7x"
    if "v5p" in kind or "v5" in kind:
        return "v5p"
    if "v4" in kind:
        return "v4"
    return "unknown"


@functools.lru_cache(maxsize=None)
def _vmem_budgets():
    """(plan_bytes, limit_bytes): plan ~0.65*cap, scoped limit ~0.85*cap."""
    cap = None
    try:
        cap = getattr(pltpu.get_tpu_info(), "vmem_capacity_bytes", None)
    except Exception:
        cap = None
    if not cap or cap <= 0:
        cap = 64 * 1024 * 1024   # conservative default (v7x per-core VMEM)
    cap = int(cap)
    return int(0.65 * cap), int(0.85 * cap)


@functools.lru_cache(maxsize=None)
def _buffered_single_supported():
    """Probe (once) whether pipeline_mode=pl.Buffered(1) lowers and runs."""
    buffered = getattr(pl, "Buffered", None)
    if buffered is None:
        return False
    try:
        spec = pl.BlockSpec((8, 128), lambda i: (0, 0), pipeline_mode=buffered(1))
    except TypeError:
        return False

    def _probe_kernel(x_ref, o_ref):
        o_ref[...] = x_ref[...] + 1.0

    try:
        x = jnp.arange(8 * 128, dtype=jnp.float32).reshape(8, 128)
        out = pl.pallas_call(
            _probe_kernel,
            out_shape=jax.ShapeDtypeStruct((8, 128), jnp.float32),
            grid=(2,),
            in_specs=[spec],
            out_specs=pl.BlockSpec((8, 128), lambda i: (0, 0)),
        )(x)
        out = jax.block_until_ready(out)
        return bool(jnp.allclose(out, x + 1.0))
    except Exception:
        return False


# ---------------------------------------------------------------------------
# Tiling helpers
# ---------------------------------------------------------------------------
def _round_up(n, m):
    return ((n + m - 1) // m) * m


def _estimate_vmem(width, th, num_h, itemsize, tm, single_buffer_resident):
    """Rough VMEM footprint for one configuration (bytes)."""
    wbuf = 1 if (num_h == 1 and single_buffer_resident) else 2
    weights = wbuf * 2 * width * th * itemsize      # W_fc chunk + W_proj chunk
    biases = wbuf * (th + width) * itemsize
    x_io = 2 * tm * width * itemsize                # x tile, double-buffered
    o_io = 2 * tm * width * itemsize                # out tile, double-buffered
    acc = tm * width * 4                            # f32 accumulator scratch
    h_live = tm * th * (4 + itemsize)               # f32 intermediate + cast copy
    return weights + biases + x_io + o_io + acc + h_live


def _hidden_divisors(hidden):
    """Divisors of `hidden` that are multiples of 128 (plus `hidden` itself)."""
    divs = [d for d in range(128, hidden, 128) if hidden % d == 0]
    return [hidden] + sorted(divs, reverse=True)


def _pick_hidden_tile(width, hidden, itemsize, tm, plan_bytes, single_buffer_ok):
    """Largest hidden chunk (divisor of hidden, lane-aligned) fitting the plan."""
    for th in _hidden_divisors(hidden):
        num_h = hidden // th
        if _estimate_vmem(width, th, num_h, itemsize, tm, single_buffer_ok) <= plan_bytes:
            return th
    return None


# ---------------------------------------------------------------------------
# Public wrapper
# ---------------------------------------------------------------------------
def mlp_pallas(x, w_fc, b_fc, w_proj, b_proj, *, tm=None):
    """x: (..., width). w_fc: (width, 4*width). w_proj: (4*width, width)."""
    width = x.shape[-1]
    hidden = 4 * width
    assert w_fc.shape == (width, hidden)
    assert b_fc.shape == (hidden,)
    assert w_proj.shape == (hidden, width)
    assert b_proj.shape == (width,)

    lead_shape = x.shape[:-1]
    x2d = x.reshape(-1, width)
    M = x2d.shape[0]
    dtype = x.dtype
    itemsize = jnp.dtype(dtype).itemsize
    pack = _SUBLANE_PACK.get(itemsize, 8)

    plan_bytes, limit_bytes = _vmem_budgets()
    gen = _tpu_generation()
    ncores = 2 if gen in ("v7x", "v5p", "v4") else 1
    buffered_ok = _buffered_single_supported()

    def clamp_tm(t):
        t = max(pack, _round_up(int(t), pack))
        return min(t, _round_up(M, pack))

    tm_req = 256 if tm is None else int(tm)
    tm_eff = clamp_tm(tm_req)

    # ---- choose the hidden split ------------------------------------------
    if _estimate_vmem(width, hidden, 1, itemsize, tm_eff, buffered_ok) <= plan_bytes:
        # Fully-resident weights: compute-bound regime, no hidden split.
        th = hidden
    else:
        # Weight-streaming regime: W_fc + W_proj are re-streamed per token
        # tile, so raise tm toward the chip's machine balance (arithmetic
        # intensity ~ 2*tm/itemsize FLOP/byte), multiple of 256 for the MXU.
        if tm is None:
            balance = _MACHINE_BALANCE.get(gen, 400)
            tm_eff = clamp_tm(min(1024, _round_up(max(256, (balance * itemsize) // 2), 256)))
        th = _pick_hidden_tile(width, hidden, itemsize, tm_eff, plan_bytes, buffered_ok)
        while th is None and tm_eff > pack:
            new_tm = clamp_tm(tm_eff // 2)
            if new_tm >= tm_eff:
                break
            tm_eff = new_tm
            th = _pick_hidden_tile(width, hidden, itemsize, tm_eff, plan_bytes, buffered_ok)
        if th is None:
            # Best effort: smallest lane-aligned chunk; the gap between the
            # plan (0.65*cap) and the scoped limit (0.85*cap) absorbs overshoot.
            th = _hidden_divisors(hidden)[-1]

    # ---- multi-core chips: make sure the parallel token axis splits --------
    if ncores > 1 and M > pack:
        split_tm = _round_up(pl.cdiv(M, ncores), pack)
        tm_eff = max(pack, min(tm_eff, split_tm))

    num_m = pl.cdiv(M, tm_eff)
    num_h = hidden // th
    resident = (num_h == 1)

    # bf16 elementwise GELU only where the VPU supports bf16 (v6e / v7x).
    lowp_gelu = (dtype == jnp.bfloat16) and gen in ("v6e", "v7x")

    bfc2d = b_fc.reshape(1, hidden)
    bproj2d = b_proj.reshape(1, width)

    def wspec(shape, index_map, constant_index):
        # Constant-index operands never change block -> no prefetch buffer
        # needed; single-buffer them to halve their VMEM footprint.
        if buffered_ok and constant_index:
            return pl.BlockSpec(shape, index_map, pipeline_mode=pl.Buffered(1))
        return pl.BlockSpec(shape, index_map)

    grid_spec = pltpu.PrefetchScalarGridSpec(
        num_scalar_prefetch=0,
        grid=(num_m, num_h),
        in_specs=[
            pl.BlockSpec((tm_eff, width), lambda i, j: (i, 0)),       # x tile
            wspec((width, th), lambda i, j: (0, j), resident),        # W_fc chunk
            wspec((1, th), lambda i, j: (0, j), resident),            # b_fc chunk
            wspec((th, width), lambda i, j: (j, 0), resident),        # W_proj chunk
            wspec((1, width), lambda i, j: (0, 0), True),             # b_proj
        ],
        out_specs=pl.BlockSpec((tm_eff, width), lambda i, j: (i, 0)),
        scratch_shapes=[pltpu.VMEM((tm_eff, width), jnp.float32)],
    )

    out = pl.pallas_call(
        functools.partial(_mlp_kernel, lowp_gelu=lowp_gelu),
        out_shape=jax.ShapeDtypeStruct((M, width), dtype),
        grid_spec=grid_spec,
        compiler_params=pltpu.CompilerParams(
            dimension_semantics=("parallel", "arbitrary"),
            vmem_limit_bytes=limit_bytes,
        ),
    )(x2d, w_fc, bfc2d, w_proj, bproj2d)

    return out.reshape(*lead_shape, width)


def mlp_reference(x, w_fc, b_fc, w_proj, b_proj):
    h = x @ w_fc + b_fc
    h = jax.nn.gelu(h, approximate=False)
    return h @ w_proj + b_proj


if __name__ == "__main__":
    key = jax.random.PRNGKey(0)
    batch, seq, width = 2, 8, 32
    init_scale = 0.25
    dtype = jnp.float32

    k_x, k_fc, k_proj = jax.random.split(key, 3)

    # init_linear: weight ~ N(0, init_scale^2), bias = 0.  PyTorch Linear
    # stores (out, in); we keep the transposed (in, out) layout.
    w_fc = (init_scale * jax.random.normal(k_fc, (4 * width, width), dtype)).T
    b_fc = jnp.zeros((4 * width,), dtype)
    w_proj = (init_scale * jax.random.normal(k_proj, (width, 4 * width), dtype)).T
    b_proj = jnp.zeros((width,), dtype)

    x = jax.random.normal(k_x, (batch, seq, width), dtype)

    out = mlp_pallas(x, w_fc, b_fc, w_proj, b_proj)
    out = jax.block_until_ready(out)

    ref = mlp_reference(x, w_fc, b_fc, w_proj, b_proj)
    assert out.shape == (batch, seq, width)
    assert jnp.allclose(out, ref, atol=1e-5, rtol=1e-5), "mismatch vs reference"

    print("KERNEL_OK")
</pallas_src>

<mosaic_0001>
module attributes {stable_mosaic.version = 11 : i64} {
  func.func @_probe_kernel(%arg0: i32, %arg1: memref<8x128xf32, #tpu.memory_space<vmem>>, %arg2: memref<8x128xf32, #tpu.memory_space<vmem>>) attributes {dimension_semantics = [#tpu.dimension_semantics<arbitrary>], iteration_bounds = array<i64: 2>, scalar_prefetch = 0 : i64, scratch_operands = 0 : i64, tpu.core_type = #tpu.core_type<tc>, window_params = [{pipeline_mode = #tpu.pipeline_mode<synchronous>, transform_indices = @transform_0, window_bounds = array<i64: 8, 128>}, {pipeline_mode = #tpu.pipeline_mode<synchronous>, transform_indices = @transform_1, window_bounds = array<i64: 8, 128>}]} {
    %c0 = arith.constant 0 : index
    %c0_0 = arith.constant 0 : index
    %0 = vector.load %arg1[%c0, %c0_0] : memref<8x128xf32, #tpu.memory_space<vmem>>, vector<8x128xf32>
    %cst = arith.constant 1.000000e+00 : f32
    %1 = vector.broadcast %cst : f32 to vector<8x128xf32>
    %2 = arith.addf %0, %1 : vector<8x128xf32>
    %c0_1 = arith.constant 0 : index
    %c0_2 = arith.constant 0 : index
    %3 = vector.load %arg2[%c0_1, %c0_2] : memref<8x128xf32, #tpu.memory_space<vmem>>, vector<8x128xf32>
    tpu.vector_store %arg2[%c0_1, %c0_2], %2 {strides = array<i32>} : memref<8x128xf32, #tpu.memory_space<vmem>>, vector<8x128xf32>,
    return
  }
  func.func @transform_0(%arg0: i32) -> (i32, i32) {
    %c0_i32 = arith.constant 0 : i32
    %c0_i32_0 = arith.constant 0 : i32
    %c0_i32_1 = arith.constant 0 : i32
    return %c0_i32, %c0_i32_0 : i32, i32
  }
  func.func @transform_1(%arg0: i32) -> (i32, i32) {
    %c0_i32 = arith.constant 0 : i32
    %c0_i32_0 = arith.constant 0 : i32
    %c0_i32_1 = arith.constant 0 : i32
    return %c0_i32, %c0_i32_0 : i32, i32
  }
}

module attributes {stable_mosaic.version = 11 : i64} {
  func.func @_mlp_kernel(%arg0: i32, %arg1: i32, %arg2: memref<16x32xf32, #tpu.memory_space<vmem>>, %arg3: memref<32x128xf32, #tpu.memory_space<vmem>>, %arg4: memref<1x128xf32, #tpu.memory_space<vmem>>, %arg5: memref<128x32xf32, #tpu.memory_space<vmem>>, %arg6: memref<1x32xf32, #tpu.memory_space<vmem>>, %arg7: memref<16x32xf32, #tpu.memory_space<vmem>>, %arg8: memref<16x32xf32, #tpu.memory_space<vmem>>) attributes {dimension_semantics = [#tpu.dimension_semantics<parallel>, #tpu.dimension_semantics<arbitrary>], iteration_bounds = array<i64: 1, 1>, scalar_prefetch = 0 : i64, scratch_operands = 1 : i64, tpu.core_type = #tpu.core_type<tc>, window_params = [{transform_indices = @transform_0, window_bounds = array<i64: 16, 32>}, {transform_indices = @transform_1, window_bounds = array<i64: 32, 128>}, {transform_indices = @transform_2, window_bounds = array<i64: 1, 128>}, {transform_indices = @transform_3, window_bounds = array<i64: 128, 32>}, {pipeline_mode = #tpu.pipeline_mode<synchronous>, transform_indices = @transform_4, window_bounds = array<i64: 1, 32>}, {transform_indices = @transform_5, window_bounds = array<i64: 16, 32>}]} {
    %c0_i32 = arith.constant 0 : i32
    %0 = arith.cmpi eq, %arg1, %c0_i32 : i32
    %1 = arith.extui %0 : i1 to i32
    %c0_i32_0 = arith.constant 0 : i32
    %2 = arith.cmpi ne, %1, %c0_i32_0 : i32
    scf.if %2 {
      %cst_18 = arith.constant 0.000000e+00 : f32
      %25 = vector.broadcast %cst_18 : f32 to vector<16x32xf32>
      %c0_19 = arith.constant 0 : index
      %c0_20 = arith.constant 0 : index
      %26 = vector.load %arg8[%c0_19, %c0_20] : memref<16x32xf32, #tpu.memory_space<vmem>>, vector<16x32xf32>
      tpu.vector_store %arg8[%c0_19, %c0_20], %25 {strides = array<i32>} : memref<16x32xf32, #tpu.memory_space<vmem>>, vector<16x32xf32>,
    } else {
    }
    %c0 = arith.constant 0 : index
    %c0_1 = arith.constant 0 : index
    %3 = vector.load %arg2[%c0, %c0_1] : memref<16x32xf32, #tpu.memory_space<vmem>>, vector<16x32xf32>
    %c0_2 = arith.constant 0 : index
    %c0_3 = arith.constant 0 : index
    %4 = vector.load %arg3[%c0_2, %c0_3] : memref<32x128xf32, #tpu.memory_space<vmem>>, vector<32x128xf32>
    %cst = arith.constant dense<0.000000e+00> : vector<16x128xf32>
    %5 = tpu.matmul %3, %4, %cst {dimension_numbers = #tpu.dot_dimension_numbers<[1], [0], [0], [1], [0, 0, 1, 1], [], []>} : vector<16x32xf32>, vector<32x128xf32>, vector<16x128xf32> -> vector<16x128xf32>
    %c0_4 = arith.constant 0 : index
    %c0_5 = arith.constant 0 : index
    %6 = vector.load %arg4[%c0_4, %c0_5] : memref<1x128xf32, #tpu.memory_space<vmem>>, vector<1x128xf32>
    %7 = vector.broadcast %6 : vector<1x128xf32> to vector<16x128xf32>
    %8 = arith.addf %5, %7 : vector<16x128xf32>
    %cst_6 = arith.constant 5.000000e-01 : f32
    %9 = vector.broadcast %cst_6 : f32 to vector<16x128xf32>
    %10 = arith.mulf %9, %8 : vector<16x128xf32>
    %cst_7 = arith.constant 0.707106769 : f32
    %11 = vector.broadcast %cst_7 : f32 to vector<16x128xf32>
    %12 = arith.mulf %8, %11 : vector<16x128xf32>
    %13 = math.erf %12 : vector<16x128xf32>
    %cst_8 = arith.constant 1.000000e+00 : f32
    %14 = vector.broadcast %cst_8 : f32 to vector<16x128xf32>
    %15 = arith.addf %14, %13 : vector<16x128xf32>
    %16 = arith.mulf %10, %15 : vector<16x128xf32>
    %c0_9 = arith.constant 0 : index
    %c0_10 = arith.constant 0 : index
    %17 = vector.load %arg8[%c0_9, %c0_10] : memref<16x32xf32, #tpu.memory_space<vmem>>, vector<16x32xf32>
    %c0_11 = arith.constant 0 : index
    %c0_12 = arith.constant 0 : index
    %18 = vector.load %arg5[%c0_11, %c0_12] : memref<128x32xf32, #tpu.memory_space<vmem>>, vector<128x32xf32>
    %cst_13 = arith.constant dense<0.000000e+00> : vector<16x32xf32>
    %19 = tpu.matmul %16, %18, %cst_13 {dimension_numbers = #tpu.dot_dimension_numbers<[1], [0], [0], [1], [0, 0, 1, 1], [], []>} : vector<16x128xf32>, vector<128x32xf32>, vector<16x32xf32> -> vector<16x32xf32>
    %20 = arith.addf %17, %19 : vector<16x32xf32>
    %c0_14 = arith.constant 0 : index
    %c0_15 = arith.constant 0 : index
    %21 = vector.load %arg8[%c0_14, %c0_15] : memref<16x32xf32, #tpu.memory_space<vmem>>, vector<16x32xf32>
    tpu.vector_store %arg8[%c0_14, %c0_15], %20 {strides = array<i32>} : memref<16x32xf32, #tpu.memory_space<vmem>>, vector<16x32xf32>,
    %c0_i32_16 = arith.constant 0 : i32
    %22 = arith.cmpi eq, %arg1, %c0_i32_16 : i32
    %23 = arith.extui %22 : i1 to i32
    %c0_i32_17 = arith.constant 0 : i32
    %24 = arith.cmpi ne, %23, %c0_i32_17 : i32
    scf.if %24 {
      %c0_18 = arith.constant 0 : index
      %c0_19 = arith.constant 0 : index
      %25 = vector.load %arg8[%c0_18, %c0_19] : memref<16x32xf32, #tpu.memory_space<vmem>>, vector<16x32xf32>
      %c0_20 = arith.constant 0 : index
      %c0_21 = arith.constant 0 : index
      %26 = vector.load %arg6[%c0_20, %c0_21] : memref<1x32xf32, #tpu.memory_space<vmem>>, vector<1x32xf32>
      %27 = vector.broadcast %26 : vector<1x32xf32> to vector<16x32xf32>
      %28 = arith.addf %25, %27 : vector<16x32xf32>
      %c0_22 = arith.constant 0 : index
      %c0_23 = arith.constant 0 : index
      %29 = vector.load %arg7[%c0_22, %c0_23] : memref<16x32xf32, #tpu.memory_space<vmem>>, vector<16x32xf32>
      tpu.vector_store %arg7[%c0_22, %c0_23], %28 {strides = array<i32>} : memref<16x32xf32, #tpu.memory_space<vmem>>, vector<16x32xf32>,
    } else {
    }
    return
  }
  func.func @transform_0(%arg0: i32, %arg1: i32) -> (i32, i32) {
    %c0_i32 = arith.constant 0 : i32
    %c0_i32_0 = arith.constant 0 : i32
    return %arg0, %c0_i32 : i32, i32
  }
  func.func @transform_1(%arg0: i32, %arg1: i32) -> (i32, i32) {
    %c0_i32 = arith.constant 0 : i32
    %c0_i32_0 = arith.constant 0 : i32
    return %c0_i32, %arg1 : i32, i32
  }
  func.func @transform_2(%arg0: i32, %arg1: i32) -> (i32, i32) {
    %c0_i32 = arith.constant 0 : i32
    %c0_i32_0 = arith.constant 0 : i32
    return %c0_i32, %arg1 : i32, i32
  }
  func.func @transform_3(%arg0: i32, %arg1: i32) -> (i32, i32) {
    %c0_i32 = arith.constant 0 : i32
    %c0_i32_0 = arith.constant 0 : i32
    return %arg1, %c0_i32 : i32, i32
  }
  func.func @transform_4(%arg0: i32, %arg1: i32) -> (i32, i32) {
    %c0_i32 = arith.constant 0 : i32
    %c0_i32_0 = arith.constant 0 : i32
    %c0_i32_1 = arith.constant 0 : i32
    return %c0_i32, %c0_i32_0 : i32, i32
  }
  func.func @transform_5(%arg0: i32, %arg1: i32) -> (i32, i32) {
    %c0_i32 = arith.constant 0 : i32
    %c0_i32_0 = arith.constant 0 : i32
    return %arg0, %c0_i32 : i32, i32
  }
}

</mosaic_0001>

<bundles_post_ra>
// kernel: tpu_custom_call.1
= control target key start
LH: loop header
LB: loop body
LE: loop exit
PB: predicated region body
PF: predicated region fallthrough
CT: control target
= control target key end

     0   :  { %6 = vsyncpa [#allocation3], 0  ;;  %s305_s0 = inlined_call_operand.hbm [shape: f32[8,128], index: 0, kind: input, shape index: {}]   ;;  %s306_s1 = inlined_call_operand.hbm [shape: f32[8,128], index: 1, kind: output, shape index: {}]  }
   0x1   :  { %7 = vsyncpa [#allocation4], 0  ;;  %s258_s6 = smov 0  }
   0x2 LB: > { %s145_s7 = sadd.s32 4294967295, %s244_s6   ;;  %p146_p0 = scmp.ge.s32.totalorder %s244_s6, 1  ;;  %s244_s6 = sphi %s258_s6, %s13_s6  }
   0x3   : > { %p60_p1 = scmp.lt.s32.totalorder %s244_s6, 3  ;;  %p270_p3 = scmp.eq.s32.totalorder %s145_s7, 0 }
   0x4   : > { %s246_s10 = smov [#allocation2]  }
   0x5   : > { %p266_p2 = pnand %p146_p0, %p60_p1  ;;  %s73_s11 = sshll.u32 %s246_s10, 4  ;;  %s74_s11 = int_to_ptr.vmem [resolvable:$true] %s73_s11 }
   0x6   : > { %s191_s12 = scalar_lea.vmem %s74_s11, 128  ;;  %p199_p10 = scmp.lt.s32.totalorder %s74_s11, %s74_s11 }
   0x7   : > { %p162_p4 = pneg %p266_p2  ;;  %p192_p7 = scmp.ne.s32.totalorder %s74_s11, %s191_s12 }
   0x8   : > { %p200_p11 = scmp.lt.s32.totalorder %s191_s12, %s191_s12 }
   0x9   : > { %p163_p5 = pnand %p270_p3, %p162_p4 }
   0xa   : > { %p201_p12 = por %p200_p11, %p199_p10 }
   0xb   : > { %p182_p6 = pneg %p163_p5 }
   0xd   : > { %p194_p8 = pnand %p192_p7, %p182_p6 }
   0xf   : > { %p195_p9 = pneg %p194_p8 }
  0x11   : > { %p202_p13 = pnand %p201_p12, %p195_p9 }
  0x13   : > { %205 = shalt.err (!%p202_p13)
}
  0x14   : > { %165 = dma.hbm_to_vmem [thread:$0]  (!%p163_p5), %s305_s0, 128, %s74_s11, [#allocation3]  }
  0x15   : > { %86 = sbr.rel (%p266_p2) target bundleno = 42 (0x2a), region = 24 }
  0x1a   : > { %235 = dma.done.wait (%p270_p3), [#allocation3], 128  }
  0x1b   : > { %237 = vsyncadd (%p270_p3), [#allocation3], 4294967168  ;;  %s247_s15 = smov [#allocation5]   ;;  %v96_v0 = vld [vmem:[#allocation2] sm:$0xff]  ;;  %p287_p0 = scmp.eq.s32.totalorder %s145_s7, 1 }
  0x1c   : > { %s106_s16 = sshll.u32 %s247_s15, 4  ;;  %v97_v1 = vadd.f32 1.0, %v96_v0  ;;  %s107_s16 = int_to_ptr.vmem [resolvable:$true] %s106_s16 }
  0x1d   : > { %s206_s18 = scalar_lea.vmem %s107_s16, 128  ;;  %p213_p5 = scmp.lt.s32.totalorder %s107_s16, %s107_s16 }
  0x1e   : > { %98 = vst [vmem:[#allocation5] sm:$0xff] %v97_v1  ;;  %p207_p1 = scmp.ne.s32.totalorder %s107_s16, %s206_s18  ;;  %p214_p6 = scmp.lt.s32.totalorder %s206_s18, %s206_s18 }
  0x20   : > { %p208_p2 = pnand %p207_p1, %p287_p0  ;;  %p215_p7 = por %p214_p6, %p213_p5 }
  0x22   : > { %p209_p4 = pneg %p208_p2 }
  0x24   : > { %p216_p3 = pnand %p215_p7, %p209_p4 }
  0x26   : > { %219 = shalt.err (!%p216_p3)
}
  0x27   : > { %159 = dma.vmem_to_hbm [thread:$0]  (%p287_p0), %s107_s16, 128, %s306_s1, [#allocation4]  }
  0x28   : > { %239 = dma.done.wait (%p287_p0), [#allocation4], 128  }
  0x29   : > { %241 = vsyncadd (%p287_p0), [#allocation4], 4294967168 }
  0x2a PF: > { %s13_s6 = sadd.s32 1, %s244_s6  }
  0x2b   : > { %p10_p8 = scmp.ge.s32.totalorder %s13_s6, 4  }
  0x2d   :  { %12 = sbr.rel (!%p10_p8) target bundleno = 2 (0x2), region = 53 }
  0x32   :  { %119 = vsyncpa [#allocation3], 1 }
  0x33   :  { %121 = vsyncpa [#allocation3 + $0x1], 1 }
  0x34   :  { %122 = vsyncpa [#allocation4], 1 }
  0x35   :  { %124 = vsyncpa [#allocation4 + $0x1], 1 }

// kernel: tpu_custom_call.1
= control target key start
LH: loop header
LB: loop body
LE: loop exit
PB: predicated region body
PF: predicated region fallthrough
CT: control target
= control target key end

     0   :  { %vm25_vm0 = vcmask 261120   ;;  %s483_s0 = inlined_call_operand.vmem [shape: f32[16,32], index: 0, kind: input, shape index: {}]   ;;  %s484_s1 = inlined_call_operand.vmem [shape: f32[32,128], index: 1, kind: input, shape index: {}]   ;;  %s485_s2 = inlined_call_operand.vmem [shape: f32[1,128], index: 2, kind: input, shape index: {}]   ;;  %s486_s3 = inlined_call_operand.vmem [shape: f32[128,32], index: 3, kind: input, shape index: {}]   ;;  %s487_s4 = inlined_call_operand.vmem [shape: f32[1,32], index: 4, kind: input, shape index: {}]   ;;  %s488_s5 = inlined_call_operand.hbm [shape: f32[16,32], index: 5, kind: output, shape index: {}]  }
   0x1   :  { %v33_v0 = vld [vmem:[%s484_s1 + $0x18] sm:$0xff]  ;;  %v32_v1 = vld [vmem:[%s484_s1 + $0x10] sm:$0xff]  ;;  %v28_v2 = vld [vmem:[%s483_s0] sm:$0xff] }
   0x2   :  { %290 = vmatprep.subr.mxu0 %v33_v0  ;;  %v31_v3 = vld [vmem:[%s484_s1 + $0x8] sm:$0xff]  ;;  %298 = vmatprep.mubr.msk.f32.mxu0 %vm25_vm0, %v28_v2  ;;  %v150_v4 = vld [vmem:[%s486_s3 + $0x78] sm:$0xff]  ;;  %v149_v5 = vld [vmem:[%s486_s3 + $0x70] sm:$0xff] }
   0x3   :  { %291 = vmatpush3.msra.mxu0 %v33_v0  ;;  %301 = vmatprep.subr.mxu1 %v150_v4 }
   0x4   :  { %292 = vmatprep.subr.mxu0 %v32_v1 }
   0x5   :  { %10 = vsyncpa [#allocation4], 0  ;;  %293 = vmatpush3.msra.mxu0 %v32_v1  ;;  %v30_v6 = vld [vmem:[%s484_s1] sm:$0xff]  ;;  %302 = vmatpush3.msra.mxu1 %v150_v4  ;;  %v148_v7 = vld [vmem:[%s486_s3 + $0x68] sm:$0xff]  ;;  %v366_v22 = vmov 0.0   ;;  %s367_s11 = smov [#allocation3]  }
   0x6   :  { %294 = vmatprep.subr.mxu0 %v31_v3  ;;  %303 = vmatprep.subr.mxu1 %v149_v5  ;;  %v29_v8 = vld [vmem:[%s483_s0 + $0x8] sm:$0xff]  ;;  %v147_v9 = vld [vmem:[%s486_s3 + $0x60] sm:$0xff]  ;;  %v146_v10 = vld [vmem:[%s486_s3 + $0x58] sm:$0xff]  ;;  %27 = vst.msk [vmem:[#allocation2 + $0x8] sm:$0xff] %vm25_vm0, %v366_v22  ;;  %s251_s12 = sshll.u32 %s367_s11, 4  ;;  %s252_s12 = int_to_ptr.vmem [resolvable:$true] %s251_s12 }
   0x7   :  { %295 = vmatpush3.msra.mxu0 %v31_v3  ;;  %304 = vmatpush3.msra.mxu1 %v149_v5  ;;  %v145_v11 = vld [vmem:[%s486_s3 + $0x50] sm:$0xff]  ;;  %v144_v12 = vld [vmem:[%s486_s3 + $0x48] sm:$0xff]  ;;  %v143_v13 = vld [vmem:[%s486_s3 + $0x40] sm:$0xff]  ;;  %26 = vst.msk [vmem:[#allocation2] sm:$0xff] %vm25_vm0, %v366_v22  ;;  %s344_s13 = scalar_lea.vmem %s252_s12, 256  ;;  %p349_p1 = scmp.lt.s32.totalorder %s252_s12, %s252_s12 }
   0x8   :  { %296 = vmatprep.subr.mxu0 %v30_v6  ;;  %305 = vmatprep.subr.mxu1 %v148_v7  ;;  %v142_v14 = vld [vmem:[%s486_s3 + $0x38] sm:$0xff]  ;;  %v141_v15 = vld [vmem:[%s486_s3 + $0x30] sm:$0xff]  ;;  %v140_v16 = vld [vmem:[%s486_s3 + $0x28] sm:$0xff]  ;;  %p345_p0 = scmp.ne.s32.totalorder %s252_s12, %s344_s13  ;;  %p350_p2 = scmp.lt.s32.totalorder %s344_s13, %s344_s13 }
   0x9   :  { %297 = vmatpush3.msra.mxu0 %v30_v6  ;;  %306 = vmatpush3.msra.mxu1 %v148_v7  ;;  %v139_v17 = vld [vmem:[%s486_s3 + $0x20] sm:$0xff]  ;;  %v138_v18 = vld [vmem:[%s486_s3 + $0x18] sm:$0xff]  ;;  %v137_v19 = vld [vmem:[%s486_s3 + $0x10] sm:$0xff] }
   0xa   :  { %299 = vmatmul.mubr.msk.f32.vlgmr.msra.gmra.mxu0 %vm25_vm0, %v29_v8  ;;  %307 = vmatprep.subr.mxu1 %v147_v9  ;;  %v136_v20 = vld [vmem:[%s486_s3 + $0x8] sm:$0xff]  ;;  %v135_v21 = vld [vmem:[%s486_s3] sm:$0xff]  ;;  %p351_p3 = por %p350_p2, %p349_p1 }
   0xb   :  { %308 = vmatpush3.msra.mxu1 %v147_v9  ;;  %v262_v23 = vld [vmem:[%s485_s2] ss:$0 sm:$0xff] }
   0xc   :  { %309 = vmatprep.subr.mxu1 %v146_v10  ;;  %v265_v44 = vld [vmem:[%s487_s4] ss:$0 sm:$0xff]  ;;  %p352_p4 = pnand %p351_p3, %p345_p0 }
   0xd   :  { %310 = vmatpush3.msra.mxu1 %v146_v10  ;;  %v134_v38 = vld [vmem:[#allocation2 + $0x8] sm:$0xff] }
   0xe   :  { %311 = vmatprep.subr.mxu1 %v145_v11  ;;  %v133_v40 = vld [vmem:[#allocation2] sm:$0xff] }
   0xf   :  { %312 = vmatpush3.msra.mxu1 %v145_v11 }
  0x10   :  { %313 = vmatprep.subr.mxu1 %v144_v12 }
  0x11   :  { %314 = vmatpush3.msra.mxu1 %v144_v12 }
  0x12   :  { %315 = vmatprep.subr.mxu1 %v143_v13 }
  0x13   :  { %316 = vmatpush3.msra.mxu1 %v143_v13 }
  0x14   :  { %317 = vmatprep.subr.mxu1 %v142_v14 }
  0x15   :  { %318 = vmatpush3.msra.mxu1 %v142_v14 }
  0x16   :  { %319 = vmatprep.subr.mxu1 %v141_v15 }
  0x17   :  { %320 = vmatpush3.msra.mxu1 %v141_v15 }
  0x18   :  { %321 = vmatprep.subr.mxu1 %v140_v16 }
  0x19   :  { %322 = vmatpush3.msra.mxu1 %v140_v16 }
  0x1a   :  { %323 = vmatprep.subr.mxu1 %v139_v17 }
  0x1b   :  { %324 = vmatpush3.msra.mxu1 %v139_v17 }
  0x1c   :  { %325 = vmatprep.subr.mxu1 %v138_v18 }
  0x1d   :  { %326 = vmatpush3.msra.mxu1 %v138_v18 }
  0x1e   :  { %327 = vmatprep.subr.mxu1 %v137_v19 }
  0x1f   :  { %328 = vmatpush3.msra.mxu1 %v137_v19 }
  0x20   :  { %329 = vmatprep.subr.mxu1 %v136_v20 }
  0x21   :  { %330 = vmatpush3.msra.mxu1 %v136_v20 }
  0x22   :  { %331 = vmatprep.subr.mxu1 %v135_v21 }
  0x23   :  { %332 = vmatpush3.msra.mxu1 %v135_v21 }
  0xca   :  { %v300_v24 = vpop.f32.mrf.mxu0 }
  0xcb   :  { %v120_v25 = vadd.f32 %v300_v24, %v262_v23 }
  0xcc   :  { %v114_v26 = vpop.f32.mrf.mxu0 }
  0xcd   :  { %v126_v27 = vmul.f32 0.70710677, %v120_v25  ;;  %v115_v28 = vadd.f32 %v262_v23, %v114_v26  ;;  %v124_v35 = vmul.f32 0.5, %v120_v25 }
  0xcf   :  { %340 = verf.f32 %v126_v27  ;;  %v125_v29 = vmul.f32 0.70710677, %v115_v28  ;;  %v123_v33 = vmul.f32 0.5, %v115_v28 }
  0xd1   :  { %342 = verf.f32 %v125_v29 }
  0xdc   :  { %v341_v30 = vpop.eup %340 }
  0xdd   :  { %v130_v32 = vadd.f32 1.0, %v341_v30 }
  0xde   :  { %v343_v31 = vpop.eup %342 }
  0xdf   :  { %v129_v34 = vadd.f32 1.0, %v343_v31  ;;  %v132_v37 = vmul.f32 %v130_v32, %v124_v35 }
  0xe1   :  { %v131_v36 = vmul.f32 %v129_v34, %v123_v33 }
  0xe3   :  { %333 = vmatprep.mubr.f32.mxu1 %v131_v36 }
  0xe4   :  { %334 = vmatmul.mubr.f32.vlgmr.msra.gmra.mxu1 %v132_v37 }
 0x1a4   :  { %v335_v39 = vpop.f32.mrf.mxu1 }
 0x1a5   :  { %v227_v41 = vadd.f32 %v335_v39, %v134_v38 }
 0x1a6   :  { %v217_v42 = vpop.f32.mrf.mxu1 }
 0x1a7   :  { %229 = vst.msk [vmem:[#allocation2 + $0x8] sm:$0xff] %vm25_vm0, %v227_v41  ;;  %v226_v43 = vadd.f32 %v217_v42, %v133_v40 }
 0x1a9   :  { %228 = vst.msk [vmem:[#allocation2] sm:$0xff] %vm25_vm0, %v226_v43 }
 0x1ae   :  { %v234_v45 = vld [vmem:[#allocation2 + $0x8] sm:$0xff] }
 0x1af   :  { %v243_v46 = vadd.f32 %v265_v44, %v234_v45 }
 0x1b0   :  { %v233_v47 = vld [vmem:[#allocation2] sm:$0xff] }
 0x1b1   :  { %v242_v48 = vadd.f32 %v265_v44, %v233_v47  ;;  %245 = vst.msk [vmem:[#allocation3 + $0x8] sm:$0xff] %vm25_vm0, %v243_v46 }
 0x1b3   :  { %244 = vst.msk [vmem:[#allocation3] sm:$0xff] %vm25_vm0, %v242_v48 }
 0x1b4   :  { %355 = shalt.err (!%p352_p4)
}
 0x1b5   :  { %s368_s0 = smov 128   ;;  %s369_s4 = smov 8  }
 0x1b6   :  { %257 = dma.vmem_to_hbm [thread:$0]  %s252_s12, 256, %s488_s5, [#allocation4], %s368_s0, %s368_s0, %s369_s4  }
 0x1b7   :  { %364 = dma.done.wait [#allocation4], 256  }
 0x1b8   :  { %365 = vsyncadd [#allocation4], 4294967040 }
 0x1b9   :  { %261 = vsyncpa [#allocation4], 1 }

</bundles_post_ra>
